<compile_context>
chip_gen: v7x
topology: tpu7x:2x2x1
jax: 0.10.0
libtpu: 0.0.40
codegen_flags: <defaults>
</compile_context>

<pallas_src>
import functools

import jax
import jax.numpy as jnp
from jax import lax
from jax.experimental import pallas as pl
from jax.experimental.pallas import tpu as pltpu


# --------------------------------------------------------------------------- #
# Kernels
# --------------------------------------------------------------------------- #
def _flat_kernel(prompt_ref, img_ref, out_ref, *, l, d, matmul_dtype):
    # prompt_ref: (tile_n, L*D) native dtype
    # img_ref:    (M, D) pre-normalized, already in matmul_dtype
    # out_ref:    (M, tile_n) f32
    block = prompt_ref[...]
    # Mean's 1/L factor cancels under L2 normalization -> plain sum.
    # L-1 lane-aligned VALU adds (D % 128 == 0 guaranteed by the wrapper).
    p_sum = block[:, 0:d].astype(jnp.float32)
    for j in range(1, l):
        p_sum = p_sum + block[:, j * d:(j + 1) * d].astype(jnp.float32)

    # Deferred normalization: scale the small (M, tile_n) result instead of
    # dividing the big (tile_n, D) operand.  rsqrt issues on the EUP.
    p_inv = lax.rsqrt(jnp.sum(p_sum * p_sum, axis=-1))            # (tile_n,)

    # MXU matmul contracting D (last dim of both operands, no transpose).
    s = lax.dot_general(
        img_ref[...],
        p_sum.astype(matmul_dtype),
        dimension_numbers=(((1,), (1,)), ((), ())),
        preferred_element_type=jnp.float32,
    )                                                             # (M, tile_n)
    out_ref[...] = s * p_inv[None, :]


def _kernel_3d(prompt_ref, img_ref, out_ref, *, matmul_dtype):
    # Fallback path when D % 128 != 0.  prompt_ref: (tile_n, L, D).
    p_sum = jnp.sum(prompt_ref[...].astype(jnp.float32), axis=1)  # (tile_n, D)
    p_inv = lax.rsqrt(jnp.sum(p_sum * p_sum, axis=-1))            # (tile_n,)
    s = lax.dot_general(
        img_ref[...],
        p_sum.astype(matmul_dtype),
        dimension_numbers=(((1,), (1,)), ((), ())),
        preferred_element_type=jnp.float32,
    )
    out_ref[...] = s * p_inv[None, :]


# --------------------------------------------------------------------------- #
# Tiling / VMEM heuristics
# --------------------------------------------------------------------------- #
def _round_up(x, mult):
    return ((x + mult - 1) // mult) * mult


def _vmem_budget_and_limit():
    """Generation-aware budgets: v5e/v6e have 128 MiB physical VMEM, v7x 64 MiB."""
    cap = None
    try:
        info = pltpu.get_tpu_info()
        cap = getattr(info, "vmem_capacity_bytes", None)
    except Exception:
        cap = None
    if cap is not None and cap >= 96 * 1024 * 1024:
        # v5e / v6e: raise the ceiling so large L*D does not force tile_n=128.
        return 56 * 1024 * 1024, 64 * 1024 * 1024
    # v7x (64 MiB physical) or unknown backend: stay conservative.
    return 24 * 1024 * 1024, 32 * 1024 * 1024


def _choose_tile_n(n, l, d, m, prompt_esize, ip_esize, budget):
    """Largest lane-dense (multiple-of-128) tile over N that fits the budget,
    preferring >= 2 grid steps so the 'parallel' axis can shard across v7x's
    two TensorCores."""
    if n <= 128:
        return n                                  # single block; equals full dim
    half_up = _round_up(-(-n // 2), 128)          # round_up(ceil(n/2), 128)
    tile = min(512, max(128, half_up))
    tile = (tile // 128) * 128
    while tile > 128:
        need = (2 * tile * l * d * prompt_esize   # double-buffered prompt block
                + 2 * m * d * ip_esize            # image_prompt block
                + 2 * m * tile * 4)               # double-buffered f32 output
        if need <= budget:
            return tile
        tile -= 128
    return 128


# --------------------------------------------------------------------------- #
# Wrappers
# --------------------------------------------------------------------------- #
def image_prompt_loss_nld(prompt_nld, image_prompt_2d, *,
                          matmul_dtype=jnp.bfloat16, tile_n=None):
    """Fast path. prompt_nld: (N, L, D) any float dtype (kept native for DMA),
    image_prompt_2d: (M, D) -> cos (M, N) f32."""
    n, l, d = prompt_nld.shape
    m = image_prompt_2d.shape[0]
    prompt_esize = jnp.dtype(prompt_nld.dtype).itemsize
    ip_esize = jnp.dtype(matmul_dtype).itemsize

    budget, vmem_limit = _vmem_budget_and_limit()
    if tile_n is None:
        tile_n = _choose_tile_n(n, l, d, m, prompt_esize, ip_esize, budget)

    # Hoist the image-prompt normalization out of the per-step kernel body:
    # tiny (M, D) XLA op, removes a redundant XLU reduce + EUP rsqrt + cast
    # repeated every grid step.
    ip = image_prompt_2d.astype(jnp.float32)
    ip = ip * lax.rsqrt(jnp.sum(ip * ip, axis=-1, keepdims=True))
    ip = ip.astype(matmul_dtype)

    grid = (pl.cdiv(n, tile_n),)
    compiler_params = pltpu.CompilerParams(
        dimension_semantics=("parallel",),
        vmem_limit_bytes=vmem_limit,
    )

    if d % 128 == 0:
        # Free metadata reshape (L, D are trailing contiguous dims): dense DMA,
        # no sublane padding of the small L axis, exact VMEM byte estimate.
        prompt_in = prompt_nld.reshape(n, l * d)
        kernel = functools.partial(_flat_kernel, l=l, d=d, matmul_dtype=matmul_dtype)
        prompt_spec = pl.BlockSpec((tile_n, l * d), lambda i: (i, 0))
        # TODO(synk): if profiling shows exposed DMA gaps at tile_n=128, add
        # pipeline_mode=pl.Buffered(3) on this BlockSpec.
    else:
        prompt_in = prompt_nld
        kernel = functools.partial(_kernel_3d, matmul_dtype=matmul_dtype)
        prompt_spec = pl.BlockSpec((tile_n, l, d), lambda i: (i, 0, 0))

    # No padding: ragged last block is handled by Pallas (padded reads only
    # touch out-of-bounds output lanes, whose writes are discarded).
    out = pl.pallas_call(
        kernel,
        out_shape=jax.ShapeDtypeStruct((m, n), jnp.float32),
        grid=grid,
        in_specs=[
            prompt_spec,
            pl.BlockSpec((m, d), lambda i: (0, 0)),   # resident across the grid
        ],
        out_specs=pl.BlockSpec((m, tile_n), lambda i: (0, i)),
        compiler_params=compiler_params,
    )(prompt_in, ip)
    return out


def image_prompt_loss(prompt, image_prompt, gt=None, *,
                      matmul_dtype=jnp.bfloat16, tile_n=None):
    """PyTorch-layout entry: prompt (N, D, L), image_prompt (M, D, 1). `gt` is unused."""
    # NOTE: this transpose is one full HBM pass over `prompt`; prefer producing
    # the (N, L, D) layout upstream and calling image_prompt_loss_nld directly.
    prompt_nld = jnp.transpose(prompt, (0, 2, 1))
    img = jnp.squeeze(image_prompt, 2)
    return image_prompt_loss_nld(prompt_nld, img,
                                 matmul_dtype=matmul_dtype, tile_n=tile_n)


def _reference(prompt, image_prompt):
    # Pure-JAX mirror of the PyTorch forward (prompt NDL, image_prompt MD1).
    p = jnp.mean(prompt.astype(jnp.float32), axis=2)
    ip = jnp.squeeze(image_prompt.astype(jnp.float32), 2)
    p = p / jnp.linalg.norm(p, axis=-1, keepdims=True)
    ip = ip / jnp.linalg.norm(ip, axis=-1, keepdims=True)
    return ip @ p.T


if __name__ == "__main__":
    key = jax.random.PRNGKey(0)
    k1, k2, k3, k4, k5, k6, k7 = jax.random.split(key, 7)

    # --- Test 1: PyTorch-layout wrapper, small shapes, f32 matmul (tight check).
    N, D, L, M = 8, 128, 4, 2
    prompt = jax.random.normal(k1, (N, D, L), dtype=jnp.float32)
    image_prompt = jax.random.normal(k2, (M, D, 1), dtype=jnp.float32)
    gt = jax.random.normal(k3, (M, N), dtype=jnp.float32)         # unused by forward

    ref = _reference(prompt, image_prompt)
    cos_f32 = jax.block_until_ready(
        image_prompt_loss(prompt, image_prompt, gt, matmul_dtype=jnp.float32))
    assert cos_f32.shape == (M, N)
    assert jnp.allclose(cos_f32, ref, atol=1e-5, rtol=1e-5)

    # Default bf16 MXU path on the same inputs (looser tolerance, f32 accumulation).
    cos_bf16 = jax.block_until_ready(image_prompt_loss(prompt, image_prompt, gt))
    assert jnp.allclose(cos_bf16, ref, atol=2e-2, rtol=2e-2)

    # --- Test 2: ragged grid (N not a multiple of tile_n), no padding, NLD path.
    N2, D2, L2, M2 = 200, 128, 4, 8
    prompt2 = jax.random.normal(k4, (N2, L2, D2), dtype=jnp.float32)  # already (N, L, D)
    img2 = jax.random.normal(k5, (M2, D2), dtype=jnp.float32)
    cos2 = jax.block_until_ready(
        image_prompt_loss_nld(prompt2, img2, matmul_dtype=jnp.float32, tile_n=128))
    ref2 = _reference(jnp.transpose(prompt2, (0, 2, 1)), img2[..., None])
    assert cos2.shape == (M2, N2)
    assert jnp.allclose(cos2, ref2, atol=1e-5, rtol=1e-5)

    # --- Test 3: native bf16 prompt DMA (no wrapper cast), default bf16 matmul.
    prompt3 = prompt2.astype(jnp.bfloat16)
    cos3 = jax.block_until_ready(image_prompt_loss_nld(prompt3, img2))
    ref3 = _reference(jnp.transpose(prompt3.astype(jnp.float32), (0, 2, 1)),
                      img2[..., None])
    assert cos3.shape == (M2, N2)
    assert jnp.allclose(cos3, ref3, atol=2e-2, rtol=2e-2)

    # --- Test 4: D not a multiple of 128 -> 3-D block fallback path.
    N4, D4, L4, M4 = 16, 64, 3, 2
    prompt4 = jax.random.normal(k6, (N4, L4, D4), dtype=jnp.float32)
    img4 = jax.random.normal(k7, (M4, D4), dtype=jnp.float32)
    cos4 = jax.block_until_ready(
        image_prompt_loss_nld(prompt4, img4, matmul_dtype=jnp.float32))
    ref4 = _reference(jnp.transpose(prompt4, (0, 2, 1)), img4[..., None])
    assert jnp.allclose(cos4, ref4, atol=1e-5, rtol=1e-5)

    print("KERNEL_OK")
</pallas_src>

<mosaic_0001>
module attributes {stable_mosaic.version = 11 : i64} {
  func.func @_flat_kernel(%arg0: i32, %arg1: memref<8x512xf32, #tpu.memory_space<vmem>>, %arg2: memref<2x128xf32, #tpu.memory_space<vmem>>, %arg3: memref<2x8xf32, #tpu.memory_space<vmem>>) attributes {dimension_semantics = [#tpu.dimension_semantics<parallel>], iteration_bounds = array<i64: 1>, scalar_prefetch = 0 : i64, scratch_operands = 0 : i64, tpu.core_type = #tpu.core_type<tc>, window_params = [{transform_indices = @transform_0, window_bounds = array<i64: 8, 512>}, {pipeline_mode = #tpu.pipeline_mode<synchronous>, transform_indices = @transform_1, window_bounds = array<i64: 2, 128>}, {transform_indices = @transform_2, window_bounds = array<i64: 2, 8>}]} {
    %c0 = arith.constant 0 : index
    %c0_0 = arith.constant 0 : index
    %0 = vector.load %arg1[%c0, %c0_0] : memref<8x512xf32, #tpu.memory_space<vmem>>, vector<8x512xf32>
    %1 = vector.extract_strided_slice %0 {offsets = [0, 0], sizes = [8, 128], strides = [1, 1]} : vector<8x512xf32> to vector<8x128xf32>
    %2 = vector.extract_strided_slice %0 {offsets = [0, 128], sizes = [8, 128], strides = [1, 1]} : vector<8x512xf32> to vector<8x128xf32>
    %3 = arith.addf %1, %2 : vector<8x128xf32>
    %4 = vector.extract_strided_slice %0 {offsets = [0, 256], sizes = [8, 128], strides = [1, 1]} : vector<8x512xf32> to vector<8x128xf32>
    %5 = arith.addf %3, %4 : vector<8x128xf32>
    %6 = vector.extract_strided_slice %0 {offsets = [0, 384], sizes = [8, 128], strides = [1, 1]} : vector<8x512xf32> to vector<8x128xf32>
    %7 = arith.addf %5, %6 : vector<8x128xf32>
    %8 = arith.mulf %7, %7 : vector<8x128xf32>
    %cst = arith.constant dense<0.000000e+00> : vector<8xf32>
    %9 = vector.multi_reduction <add>, %8, %cst [1] : vector<8x128xf32> to vector<8xf32>
    %10 = math.rsqrt %9 : vector<8xf32>
    %c0_1 = arith.constant 0 : index
    %c0_2 = arith.constant 0 : index
    %11 = vector.load %arg2[%c0_1, %c0_2] : memref<2x128xf32, #tpu.memory_space<vmem>>, vector<2x128xf32>
    %cst_3 = arith.constant dense<0.000000e+00> : vector<2x8xf32>
    %12 = tpu.matmul %11, %7, %cst_3 {dimension_numbers = #tpu.dot_dimension_numbers<[1], [1], [0], [0], [0, 0, 1, 0], [], []>} : vector<2x128xf32>, vector<8x128xf32>, vector<2x8xf32> -> vector<2x8xf32>
    %13 = vector.shape_cast %10 : vector<8xf32> to vector<1x8xf32>
    %14 = vector.broadcast %13 : vector<1x8xf32> to vector<2x8xf32>
    %15 = arith.mulf %12, %14 : vector<2x8xf32>
    %c0_4 = arith.constant 0 : index
    %c0_5 = arith.constant 0 : index
    %16 = vector.load %arg3[%c0_4, %c0_5] : memref<2x8xf32, #tpu.memory_space<vmem>>, vector<2x8xf32>
    tpu.vector_store %arg3[%c0_4, %c0_5], %15 {strides = array<i32>} : memref<2x8xf32, #tpu.memory_space<vmem>>, vector<2x8xf32>,
    return
  }
  func.func @transform_0(%arg0: i32) -> (i32, i32) {
    %c0_i32 = arith.constant 0 : i32
    %c0_i32_0 = arith.constant 0 : i32
    return %arg0, %c0_i32 : i32, i32
  }
  func.func @transform_1(%arg0: i32) -> (i32, i32) {
    %c0_i32 = arith.constant 0 : i32
    %c0_i32_0 = arith.constant 0 : i32
    %c0_i32_1 = arith.constant 0 : i32
    return %c0_i32, %c0_i32_0 : i32, i32
  }
  func.func @transform_2(%arg0: i32) -> (i32, i32) {
    %c0_i32 = arith.constant 0 : i32
    %c0_i32_0 = arith.constant 0 : i32
    return %c0_i32, %arg0 : i32, i32
  }
}

</mosaic_0001>

<bundles_post_ra>
// kernel: tpu_custom_call.1
= control target key start
LH: loop header
LB: loop body
LE: loop exit
PB: predicated region body
PF: predicated region fallthrough
CT: control target
= control target key end

     0   :  { %7 = vsyncpa [#allocation3], 0  ;;  %s239_s0 = inlined_call_operand.hbm [shape: f32[8,512], index: 0, kind: input, shape index: {}]   ;;  %s240_s1 = inlined_call_operand.vmem [shape: f32[2,128], index: 1, kind: input, shape index: {}]   ;;  %s241_s2 = inlined_call_operand.hbm [shape: f32[2,8], index: 2, kind: output, shape index: {}]  }
   0x1   :  { %8 = vsyncpa [#allocation4], 0  ;;  %s193_s9 = smov [#allocation2]   ;;  %s145_s13 = scalar_lea.hbm %s239_s0, 512 }
   0x2   :  { %s15_s10 = sshll.u32 %s193_s9, 4  ;;  %p146_p0 = scmp.ne.s32.totalorder %s239_s0, %s145_s13  ;;  %s16_s10 = int_to_ptr.vmem [resolvable:$true] %s15_s10 }
   0x3   :  { %p149_p1 = scmp.lt.u32.totalorder %s145_s13, %s239_s0 }
   0x5   :  { %p151_p2 = pnand %p149_p1, %p146_p0 }
   0x7   :  { %154 = shalt.err (!%p151_p2)
}
   0x8   :  { %s155_s18 = scalar_lea.vmem %s16_s10, 512  ;;  %p160_p4 = scmp.lt.s32.totalorder %s16_s10, %s16_s10 }
   0x9   :  { %p156_p3 = scmp.ne.s32.totalorder %s16_s10, %s155_s18  ;;  %p161_p5 = scmp.lt.s32.totalorder %s155_s18, %s155_s18 }
   0xb   :  { %p162_p6 = por %p161_p5, %p160_p4 }
   0xd   :  { %p163_p7 = pnand %p162_p6, %p156_p3 }
   0xf   :  { %166 = shalt.err (!%p163_p7)
}
  0x10   :  { %18 = dma.hbm_to_vmem [thread:$0]  %s239_s0, 512, %s16_s10, [#allocation3]  }
  0x11   :  { %189 = dma.done.wait [#allocation3], 512  }
  0x12   :  { %190 = vsyncadd [#allocation3], 4294966784  ;;  %v194_v0 = vmov 0.0   ;;  %vm195_vm0 = vmmov 0   ;;  %v24_v1 = vld [vmem:[#allocation2] sm:$0xff]  ;;  %v25_v2 = vld [vmem:[#allocation2 + $0x8] sm:$0xff]  ;;  %v107_v11 = vlaneseq }
  0x13   :  { %134 = vmatprep.subr.mxu0 %v194_v0  ;;  %136 = vmatprep.mubr.msk.f32.mxu0 %vm195_vm0, %v194_v0  ;;  %v26_v3 = vld [vmem:[#allocation2 + $0x10] sm:$0xff]  ;;  %v28_v4 = vadd.f32 %v25_v2, %v24_v1  ;;  %v27_v5 = vld [vmem:[#allocation2 + $0x18] sm:$0xff]  ;;  %v35_v8 = vld [vmem:[%s240_s1] sm:$0x3]  ;;  %s196_s0 = smov [#allocation5]   ;;  %vm115_vm1 = vcmask 58368  }
  0x14   :  { %v108_v12 = vand.u32 127, %v107_v11  ;;  %v110_v13 = vshrl.u32 %v107_v11, 7  ;;  %s123_s23 = sshll.u32 %s196_s0, 4  ;;  %s124_s23 = int_to_ptr.vmem [resolvable:$true] %s123_s23 }
  0x15   :  { %v29_v6 = vadd.f32 %v28_v4, %v26_v3  ;;  %s167_s1 = scalar_lea.vmem %s124_s23, 32  ;;  %p172_p9 = scmp.lt.s32.totalorder %s124_s23, %s124_s23 }
  0x16   :  { %v111_v14 = vsub.s32 %v108_v12, %v110_v13  ;;  %p168_p8 = scmp.ne.s32.totalorder %s124_s23, %s167_s1  ;;  %p173_p10 = scmp.lt.s32.totalorder %s167_s1, %s167_s1 }
  0x17   :  { %v30_v7 = vadd.f32 %v29_v6, %v27_v5 }
  0x18   :  { %p174_p11 = por %p173_p10, %p172_p9 }
  0x19   :  { %135 = vmatpush3.xpose.msra.mxu0 %v30_v7  ;;  %v31_v9 = vmul.f32 %v30_v7, %v30_v7 }
  0x1a   :  { %p175_p12 = pnand %p174_p11, %p168_p8 }
  0x1b   :  { %32 = vadd.xlane.f32.xlu0 %v31_v9 }
  0x1c   :  { %137 = vmatmul.mubr.f32.vlgmr.msra.gmra.mrb[0].mxu0 %v35_v8 }
  0xa8   :  { %v33_v10 = vpop.xlane.xlu0 %32 }
  0xa9   :  { %143 = vrsqrt.f32 %v33_v10 }
  0xb3   :  { %v144_v15 = vpop.eup %143 }
  0xb4   :  { %v112_v16 = vrot.slane %v144_v15, %v111_v14 }
  0xef   :  { %v102_v17 = vpop.f32.mrb[0].mxu0 }
  0xf0   :  { %v114_v18 = vmul.f32 %v112_v16, %v102_v17  ;;  %v138_v19 = vpop.f32.mrb[1].mxu0 }
  0xf2   :  { %116 = vst.msk [vmem:[#allocation5] sm:$0x3] %vm115_vm1, %v114_v18 }
  0xf3   :  { %178 = shalt.err (!%p175_p12)
}
  0xf4   :  { %s179_s26 = scalar_lea.hbm %s241_s2, 32 }
  0xf5   :  { %p180_p13 = scmp.ne.s32.totalorder %s241_s2, %s179_s26  ;;  %p183_p0 = scmp.lt.u32.totalorder %s179_s26, %s241_s2 }
  0xf7   :  { %p185_p1 = pnand %p183_p0, %p180_p13 }
  0xf9   :  { %188 = shalt.err (!%p185_p1)
}
  0xfa   :  { %126 = dma.vmem_to_hbm [thread:$0]  %s124_s23, 32, %s241_s2, [#allocation4]  }
  0xfb   :  { %191 = dma.done.wait [#allocation4], 32  }
  0xfc   :  { %192 = vsyncadd [#allocation4], 4294967264 }
  0xfd   :  { %130 = vsyncpa [#allocation3], 1 }
  0xfe   :  { %131 = vsyncpa [#allocation4], 1 }

</bundles_post_ra>
